<compile_context>
chip_gen: v5e
topology: v5e:2x2
jax: 0.10.0
libtpu: 0.0.40
codegen_flags: <defaults>
</compile_context>

<pallas_src>
import jax
import jax.numpy as jnp
from jax.experimental import pallas as pl
from jax.experimental.pallas import tpu as pltpu


def _packed_linear_kernel(x_ref, w_ref, b_ref, o_ref):
    # x_ref: (tm, R*D) VMEM
    # w_ref: (R*D, R*F) VMEM  -- block-diagonal packing of W^T, VMEM-resident
    # b_ref: (1, R*F) VMEM    -- bias tiled R times
    # o_ref: (tm, R*F) VMEM   -- lane-dense (R*F == 128 for F=16)
    o_ref[...] = (
        jnp.dot(x_ref[...], w_ref[...], preferred_element_type=jnp.float32)
        + b_ref[...]
    )


def pack_linear_params(weight, bias, replication):
    """Build block-diagonal packed weight (R*D, R*F) and tiled bias (1, R*F).

    Call once at parameter-load time (outside the per-call jit path); the
    packed weight for D=32, F=16 is only 128 KB and stays VMEM-resident.
    """
    w_t = weight.T.astype(jnp.float32)                      # (D, F), one-time transpose
    eye = jnp.eye(replication, dtype=jnp.float32)
    w_packed = jnp.kron(eye, w_t)                           # (R*D, R*F) block diagonal
    b_packed = jnp.tile(bias.astype(jnp.float32), replication).reshape(1, -1)
    return w_packed, b_packed


def _pallas_packed_linear(x, w_packed, b_packed, R, F, block_rows):
    B, D = x.shape
    Kp = R * D
    Np = R * F

    # Grid only when a block of x reaches ~1 MB (block_rows rows); otherwise a
    # single whole-array block (per-grid-step overhead would dominate).
    if B > block_rows:
        n_blocks = pl.cdiv(B, block_rows)
        Bp = n_blocks * block_rows
        use_grid = True
    else:
        Bp = pl.cdiv(B, R) * R
        use_grid = False

    if Bp != B:
        x = jnp.pad(x, ((0, Bp - B), (0, 0)))
    Mp = Bp // R
    xp = x.reshape(Mp, Kp)                                  # free row-major view

    cost = pl.CostEstimate(
        flops=2 * Mp * Kp * Np,
        transcendentals=0,
        bytes_accessed=4 * (Mp * Kp + Kp * Np + Np + Mp * Np),
    )

    if use_grid:
        tm = block_rows // R
        grid = (Mp // tm,)
        in_specs = [
            pl.BlockSpec((tm, Kp), lambda i: (i, 0)),
            pl.BlockSpec((Kp, Np), lambda i: (0, 0)),
            pl.BlockSpec((1, Np), lambda i: (0, 0)),
        ]
        out_specs = pl.BlockSpec((tm, Np), lambda i: (i, 0))
        dims = ("parallel",)                                # v7x: shard batch over 2 TCs
    else:
        grid = ()
        in_specs = [
            pl.BlockSpec((Mp, Kp), lambda: (0, 0)),
            pl.BlockSpec((Kp, Np), lambda: (0, 0)),
            pl.BlockSpec((1, Np), lambda: (0, 0)),
        ]
        out_specs = pl.BlockSpec((Mp, Np), lambda: (0, 0))
        dims = ()

    yp = pl.pallas_call(
        _packed_linear_kernel,
        out_shape=jax.ShapeDtypeStruct((Mp, Np), jnp.float32),
        grid=grid,
        in_specs=in_specs,
        out_specs=out_specs,
        compiler_params=pltpu.CompilerParams(dimension_semantics=dims),
        cost_estimate=cost,
    )(xp, w_packed, b_packed)

    y = yp.reshape(Bp, F)                                   # free view
    if Bp != B:
        y = y[:B]
    return y


def make_client_model_forward(weight, bias, *, block_rows=8192,
                              min_pallas_rows=512, force_pallas=False):
    """Returns a jitted forward(x) for ClientModel with parameters packed once."""
    F, D = weight.shape
    R = max(1, 128 // F)                                    # F=16 -> R=8, output width = 128 lanes
    # Keep grid tiles compatible with the (8, 128) sublane rule.
    block_rows = max(8 * R, (block_rows // (8 * R)) * (8 * R))

    w_packed, b_packed = pack_linear_params(weight, bias, R)
    weight_f32 = weight.astype(jnp.float32)
    bias_f32 = bias.astype(jnp.float32)

    def forward(x):
        B = x.shape[0]
        if (not force_pallas) and B < min_pallas_rows:
            # Tiny batch: fixed custom-call / DMA-setup cost would be ~100% of
            # runtime; let XLA fuse the GEMV with its neighbors.
            return x @ weight_f32.T + bias_f32
        return _pallas_packed_linear(
            x.astype(jnp.float32), w_packed, b_packed, R, F, block_rows
        )

    return jax.jit(forward)


if __name__ == "__main__":
    input_size = 32
    out_features = 16
    batch = 8

    key = jax.random.PRNGKey(0)
    kx, kw, kb, kx2 = jax.random.split(key, 4)

    # Deterministic parameter init mimicking PyTorch's default Linear init:
    # U(-1/sqrt(fan_in), 1/sqrt(fan_in)).
    bound = 1.0 / jnp.sqrt(jnp.float32(input_size))
    weight = jax.random.uniform(
        kw, (out_features, input_size), dtype=jnp.float32, minval=-bound, maxval=bound
    )
    bias = jax.random.uniform(
        kb, (out_features,), dtype=jnp.float32, minval=-bound, maxval=bound
    )

    fwd = make_client_model_forward(weight, bias)                      # natural dispatch
    fwd_pallas = make_client_model_forward(weight, bias, force_pallas=True)

    # --- small batch (B=8): exercise the Pallas kernel (single block path) ---
    x = jax.random.normal(kx, (batch, input_size), dtype=jnp.float32)
    y = fwd_pallas(x)
    jax.block_until_ready(y)
    y_ref = x @ weight.T + bias
    assert y.shape == (batch, out_features)
    assert jnp.allclose(y, y_ref, atol=1e-5, rtol=1e-5)

    # --- small batch, natural dispatch (fused XLA path) ---
    y2 = fwd(x)
    jax.block_until_ready(y2)
    assert jnp.allclose(y2, y_ref, atol=1e-5, rtol=1e-5)

    # --- large, non-divisible batch: padded grid path, "parallel" batch axis ---
    big_batch = 12000                                # cdiv(12000, 8192) = 2 grid steps
    xb = jax.random.normal(kx2, (big_batch, input_size), dtype=jnp.float32)
    yb = fwd(xb)
    jax.block_until_ready(yb)
    yb_ref = xb @ weight.T + bias
    assert yb.shape == (big_batch, out_features)
    assert jnp.allclose(yb, yb_ref, atol=1e-5, rtol=1e-5)

    print("KERNEL_OK")
</pallas_src>

<mosaic_0001>
module attributes {stable_mosaic.version = 11 : i64} {
  func.func @_packed_linear_kernel(%arg0: memref<1x256xf32, #tpu.memory_space<vmem>>, %arg1: memref<256x128xf32, #tpu.memory_space<vmem>>, %arg2: memref<1x128xf32, #tpu.memory_space<vmem>>, %arg3: memref<1x128xf32, #tpu.memory_space<vmem>>) attributes {dimension_semantics = [], scalar_prefetch = 0 : i64, scratch_operands = 0 : i64, tpu.core_type = #tpu.core_type<tc>} {
    %c0 = arith.constant 0 : index
    %c0_0 = arith.constant 0 : index
    %0 = vector.load %arg0[%c0, %c0_0] : memref<1x256xf32, #tpu.memory_space<vmem>>, vector<1x256xf32>
    %c0_1 = arith.constant 0 : index
    %c0_2 = arith.constant 0 : index
    %1 = vector.load %arg1[%c0_1, %c0_2] : memref<256x128xf32, #tpu.memory_space<vmem>>, vector<256x128xf32>
    %cst = arith.constant dense<0.000000e+00> : vector<1x128xf32>
    %2 = tpu.matmul %0, %1, %cst {dimension_numbers = #tpu.dot_dimension_numbers<[1], [0], [0], [1], [0, 0, 1, 1], [], []>} : vector<1x256xf32>, vector<256x128xf32>, vector<1x128xf32> -> vector<1x128xf32>
    %c0_3 = arith.constant 0 : index
    %c0_4 = arith.constant 0 : index
    %3 = vector.load %arg2[%c0_3, %c0_4] : memref<1x128xf32, #tpu.memory_space<vmem>>, vector<1x128xf32>
    %4 = arith.addf %2, %3 : vector<1x128xf32>
    %c0_5 = arith.constant 0 : index
    %c0_6 = arith.constant 0 : index
    %5 = vector.load %arg3[%c0_5, %c0_6] : memref<1x128xf32, #tpu.memory_space<vmem>>, vector<1x128xf32>
    tpu.vector_store %arg3[%c0_5, %c0_6], %4 {strides = array<i32>} : memref<1x128xf32, #tpu.memory_space<vmem>>, vector<1x128xf32>,
    return
  }
}

</mosaic_0001>

<bundles_post_ra>
// kernel: forward.1
= control target key start
LH: loop header
LB: loop body
LE: loop exit
PB: predicated region body
PF: predicated region fallthrough
CT: control target
= control target key end

     0   :  { %8 = vsyncpa [#allocation3], 0  ;;  %s144_s15 = smov [#allocation2]   ;;  %s145_s17 = smov 128   ;;  %s179_s0 = inlined_call_operand.vmem [shape: f32[1,256], index: 0, kind: input, shape index: {}]   ;;  %s180_s1 = inlined_call_operand.hbm [shape: f32[256,128], index: 1, kind: input, shape index: {}]   ;;  %s181_s2 = inlined_call_operand.vmem [shape: f32[1,128], index: 2, kind: input, shape index: {}]   ;;  %s182_s3 = inlined_call_operand.vmem [shape: f32[1,128], index: 3, kind: output, shape index: {}]  }
   0x1   :  { %s15_s14 = sshll.u32 %s180_s1, 4  ;;  %s17_s16 = sshll.u32 %s144_s15, 4  ;;  %s16_s14 = int_to_ptr.hbm [resolvable:$true] %s15_s14  ;;  %s18_s16 = int_to_ptr.vmem [resolvable:$true] %s17_s16 }
   0x2   :  { %s146_s18 = smov 8  }
   0x3   :  { %23 = dma.hbm_to_vmem [thread:$0]  %s16_s14, 4096, %s18_s16, [#allocation3], %s145_s17, %s145_s17, %s146_s18  }
   0x4   :  { %142 = dma.done.wait [#allocation3], 4096  }
   0x5   :  { %143 = vsyncadd [#allocation3], 4294963200  ;;  %v46_v0 = vld [vmem:[#allocation2 + $0x78] sm:$0xff]  ;;  %v45_v1 = vld [vmem:[#allocation2 + $0x70] sm:$0xff] }
   0x6   :  { %v62_v2 = vld [vmem:[#allocation2 + $0xf8] sm:$0xff]  ;;  %69 = vmatpush.msra.mxu0 %v46_v0  ;;  %v61_v3 = vld [vmem:[#allocation2 + $0xf0] sm:$0xff]  ;;  %v44_v4 = vld [vmem:[#allocation2 + $0x68] sm:$0xff] }
   0x7   :  { %89 = vmatpush.msra.mxu1 %v62_v2  ;;  %v60_v5 = vld [vmem:[#allocation2 + $0xe8] sm:$0xff]  ;;  %v43_v6 = vld [vmem:[#allocation2 + $0x60] sm:$0xff]  ;;  %v42_v8 = vld [vmem:[#allocation2 + $0x58] sm:$0xff] }
   0x8   :  { %70 = vmatpush.msra.mxu0 %v45_v1  ;;  %v59_v7 = vld [vmem:[#allocation2 + $0xe0] sm:$0xff]  ;;  %v58_v9 = vld [vmem:[#allocation2 + $0xd8] sm:$0xff]  ;;  %v41_v10 = vld [vmem:[#allocation2 + $0x50] sm:$0xff] }
   0x9   :  { %90 = vmatpush.msra.mxu1 %v61_v3  ;;  %v57_v11 = vld [vmem:[#allocation2 + $0xd0] sm:$0xff]  ;;  %v40_v12 = vld [vmem:[#allocation2 + $0x48] sm:$0xff]  ;;  %v39_v14 = vld [vmem:[#allocation2 + $0x40] sm:$0xff] }
   0xa   :  { %71 = vmatpush.msra.mxu0 %v44_v4  ;;  %v56_v13 = vld [vmem:[#allocation2 + $0xc8] sm:$0xff]  ;;  %v55_v15 = vld [vmem:[#allocation2 + $0xc0] sm:$0xff]  ;;  %v38_v16 = vld [vmem:[#allocation2 + $0x38] sm:$0xff] }
   0xb   :  { %91 = vmatpush.msra.mxu1 %v60_v5  ;;  %v54_v17 = vld [vmem:[#allocation2 + $0xb8] sm:$0xff]  ;;  %v37_v18 = vld [vmem:[#allocation2 + $0x30] sm:$0xff]  ;;  %v36_v20 = vld [vmem:[#allocation2 + $0x28] sm:$0xff] }
   0xc   :  { %72 = vmatpush.msra.mxu0 %v43_v6  ;;  %v53_v19 = vld [vmem:[#allocation2 + $0xb0] sm:$0xff]  ;;  %v52_v21 = vld [vmem:[#allocation2 + $0xa8] sm:$0xff]  ;;  %v35_v22 = vld [vmem:[#allocation2 + $0x20] sm:$0xff] }
   0xd   :  { %92 = vmatpush.msra.mxu1 %v59_v7  ;;  %v51_v23 = vld [vmem:[#allocation2 + $0xa0] sm:$0xff]  ;;  %v34_v24 = vld [vmem:[#allocation2 + $0x18] sm:$0xff]  ;;  %v33_v26 = vld [vmem:[#allocation2 + $0x10] sm:$0xff] }
   0xe   :  { %73 = vmatpush.msra.mxu0 %v42_v8  ;;  %v50_v25 = vld [vmem:[#allocation2 + $0x98] sm:$0xff]  ;;  %v49_v27 = vld [vmem:[#allocation2 + $0x90] sm:$0xff]  ;;  %v30_v28 = vld [vmem:[%s179_s0] sm:$0x3] }
   0xf   :  { %93 = vmatpush.msra.mxu1 %v58_v9  ;;  %v32_v29 = vld [vmem:[#allocation2 + $0x8] sm:$0xff]  ;;  %v31_v31 = vld [vmem:[#allocation2] sm:$0xff]  ;;  %v65_v32 = vperm.slane %v30_v28, 0  ;;  %v66_v34 = vperm.slane %v30_v28, 1 }
  0x10   :  { %74 = vmatpush.msra.mxu0 %v41_v10  ;;  %v48_v30 = vld [vmem:[#allocation2 + $0x88] sm:$0xff]  ;;  %v47_v33 = vld [vmem:[#allocation2 + $0x80] sm:$0xff] }
  0x11   :  { %94 = vmatpush.msra.mxu1 %v57_v11  ;;  %v63_v35 = vld [vmem:[%s181_s2] sm:$0x1] }
  0x12   :  { %75 = vmatpush.msra.mxu0 %v40_v12 }
  0x13   :  { %95 = vmatpush.msra.mxu1 %v56_v13 }
  0x14   :  { %76 = vmatpush.msra.mxu0 %v39_v14 }
  0x15   :  { %96 = vmatpush.msra.mxu1 %v55_v15 }
  0x16   :  { %77 = vmatpush.msra.mxu0 %v38_v16 }
  0x17   :  { %97 = vmatpush.msra.mxu1 %v54_v17 }
  0x18   :  { %78 = vmatpush.msra.mxu0 %v37_v18 }
  0x19   :  { %98 = vmatpush.msra.mxu1 %v53_v19 }
  0x1a   :  { %79 = vmatpush.msra.mxu0 %v36_v20 }
  0x1b   :  { %99 = vmatpush.msra.mxu1 %v52_v21 }
  0x1c   :  { %80 = vmatpush.msra.mxu0 %v35_v22 }
  0x1d   :  { %100 = vmatpush.msra.mxu1 %v51_v23 }
  0x1e   :  { %81 = vmatpush.msra.mxu0 %v34_v24 }
  0x1f   :  { %101 = vmatpush.msra.mxu1 %v50_v25 }
  0x20   :  { %82 = vmatpush.msra.mxu0 %v33_v26 }
  0x21   :  { %102 = vmatpush.msra.mxu1 %v49_v27 }
  0x22   :  { %83 = vmatpush.msra.mxu0 %v32_v29 }
  0x23   :  { %103 = vmatpush.msra.mxu1 %v48_v30 }
  0x24   :  { %84 = vmatpush.msra.mxu0 %v31_v31 }
  0x25   :  { %104 = vmatpush.msra.mxu1 %v47_v33  ;;  %85 = vmatmul.f32.vlgmr.msra.gmra.mxu0 %v65_v32 }
  0x26   :  { %105 = vmatmul.f32.vlgmr.msra.gmra.mxu1 %v66_v34 }
  0xa2   :  { %v86_v36 = vpop.f32.mrf.mxu0 }
  0xa3   :  { %v106_v37 = vpop.f32.mrf.mxu1  ;;  %v87_v38 = vadd.f32 %v86_v36, %v63_v35 }
  0xa5   :  { %v107_v39 = vadd.f32 %v106_v37, %v87_v38 }
  0xa7   :  { %109 = vst [vmem:[%s182_s3] sm:$0x1] %v107_v39 }
  0xa8   :  { %114 = vsyncpa [#allocation3], 1 }

</bundles_post_ra>
